<compile_context>
chip_gen: v6e
topology: v6e:2x2x1
jax: 0.10.0
libtpu: 0.0.40
codegen_flags: <defaults>
</compile_context>

<pallas_src>
import functools

import jax
import jax.numpy as jnp
from jax.experimental import pallas as pl
from jax.experimental.pallas import tpu as pltpu


def _round_up(x, m):
    return -(-x // m) * m


def _phase_meta(in_size, out_size, kernel_size, stride, padding):
    """Static per-dimension bookkeeping for the stride decomposition."""
    K, s = kernel_size, stride
    ph = K - 1 - padding
    assert ph >= 0, "padding > kernel_size - 1 not supported"
    k0, taps, off = [], [], []
    for r in range(s):
        k0_r = (ph - r) % s                       # first kernel tap of phase r
        t_r = max(0, -(-(K - k0_r) // s))         # number of taps of phase r
        off_r = (r + k0_r - ph) // s              # first input index (may be < 0)
        k0.append(k0_r); taps.append(t_r); off.append(off_r)
    n_out = [len(range(r, out_size, s)) for r in range(s)]   # rows per phase
    n_max = -(-out_size // s)
    off_min = min(off)
    t_uni = (max(off) - off_min) + max(taps)      # unified phase-independent window
    pad_lo = max(0, -off_min)
    max_idx = off_min + t_uni - 1 + n_max - 1
    pad_hi = max(0, max_idx - (in_size - 1))
    return dict(k0=k0, taps=taps, off=off, off_min=off_min, t_uni=t_uni,
                n_out=n_out, n_max=n_max, pad_lo=pad_lo, pad_hi=pad_hi,
                start=off_min + pad_lo, padded=in_size + pad_lo + pad_hi)


def _cconvt_kernel(x_ref, w_ref, b_ref, o_ref, *, tap_offsets, m):
    """One batch per grid step; all s*s phases fused into one matmul.

    x_ref : (1, 2*C_in, L)        padded image, flat spatial on lanes (bf16)
    w_ref : (s*s*2*C_out, R)      fused per-phase tap weights, R = taps*2*C_in (bf16)
    b_ref : (s*s*2*C_out, 1)      combined complex bias tiled per phase (f32)
    o_ref : (1, s*s*2*C_out, M)   lane-dense phase outputs, M multiple of 128 (f32)
    """
    # im2col: one (2*C_in, M) slab per unified tap via static flat slices,
    # built once per batch; all taps fuse into a single deep MXU contraction.
    x_col = jnp.concatenate(
        [x_ref[0, :, base:base + m] for base in tap_offsets], axis=0)     # (R, M)
    acc = jnp.dot(w_ref[...], x_col, preferred_element_type=jnp.float32)  # (P*2Co, M)
    o_ref[0] = (acc + b_ref[...]).astype(o_ref.dtype)                     # sublane bcast


class CConvTranspose2d:
    """JAX/Pallas port of the PyTorch CConvTranspose2d module."""

    def __init__(self, in_channels, out_channels, kernel_size, stride,
                 output_padding=0, padding=0, *, key=None):
        self.in_channels = in_channels
        self.out_channels = out_channels
        self.kernel_size = kernel_size
        self.output_padding = output_padding
        self.padding = padding
        self.stride = stride

        if key is None:
            key = jax.random.PRNGKey(0)
        k1, k2, k3, k4 = jax.random.split(key, 4)

        K = kernel_size
        # ConvTranspose2d weight shape: (C_in, C_out, K, K); xavier_uniform_ bound.
        fan_in = out_channels * K * K
        fan_out = in_channels * K * K
        w_bound = (6.0 / (fan_in + fan_out)) ** 0.5
        self.w_real = jax.random.uniform(
            k1, (in_channels, out_channels, K, K), jnp.float32, -w_bound, w_bound)
        self.w_im = jax.random.uniform(
            k2, (in_channels, out_channels, K, K), jnp.float32, -w_bound, w_bound)

        # ConvTranspose2d default bias init.
        b_bound = 1.0 / (in_channels * K * K) ** 0.5
        self.b_real = jax.random.uniform(
            k3, (out_channels,), jnp.float32, -b_bound, b_bound)
        self.b_im = jax.random.uniform(
            k4, (out_channels,), jnp.float32, -b_bound, b_bound)

    # ---- parameter plumbing (plain JAX glue) -------------------------------

    def _combined_weight(self):
        # flip spatially (transposed conv == regular conv with flipped kernel),
        # move to (K, K, C_in, C_out), and pack the complex multiply:
        #   [xr xi] @ [[wr,  wi],
        #              [-wi, wr]] = [xr*wr - xi*wi,  xr*wi + xi*wr]
        wr = jnp.transpose(self.w_real[:, :, ::-1, ::-1], (2, 3, 0, 1))
        wi = jnp.transpose(self.w_im[:, :, ::-1, ::-1], (2, 3, 0, 1))
        top = jnp.concatenate([wr, wi], axis=-1)
        bot = jnp.concatenate([-wi, wr], axis=-1)
        return jnp.concatenate([top, bot], axis=2)    # (K, K, 2*C_in, 2*C_out)

    def _combined_bias(self):
        return jnp.concatenate(
            [self.b_real - self.b_im, self.b_im + self.b_real])[:, None]   # (2*C_out, 1)

    def _fused_weight_lhs(self, w_comb, mh, mw):
        """All-phase fused LHS, shape (s*s*2*C_out, t_uni_h*t_uni_w*2*C_in)."""
        s = self.stride
        c2, co2 = w_comb.shape[2], w_comb.shape[3]
        rows = []
        for rh in range(s):
            dh = mh['off'][rh] - mh['off_min']
            for rw in range(s):
                dw = mw['off'][rw] - mw['off_min']
                wp = jnp.zeros((mh['t_uni'], mw['t_uni'], c2, co2), w_comb.dtype)
                for t in range(mh['taps'][rh]):
                    for u in range(mw['taps'][rw]):
                        kh = mh['k0'][rh] + s * t
                        kw = mw['k0'][rw] + s * u
                        wp = wp.at[dh + t, dw + u].set(w_comb[kh, kw])
                # contraction index ordered (t, u, c) to match the in-kernel im2col.
                rows.append(jnp.transpose(wp, (3, 0, 1, 2)).reshape(co2, -1))
        return jnp.concatenate(rows, axis=0)     # (s*s*2*C_out, R), phase-major rows

    # ---- forward -----------------------------------------------------------

    def __call__(self, x, output_size):
        """x: (N, C_in, H, W, 2); output_size: spatial size, e.g. (H_out, W_out)."""
        N, cin, H, W, _ = x.shape
        assert cin == self.in_channels
        K, s, p = self.kernel_size, self.stride, self.padding
        cout = self.out_channels
        c2, co2 = 2 * cin, 2 * cout

        # PyTorch ConvTranspose2d.forward(output_size) semantics.
        out_h, out_w = int(output_size[-2]), int(output_size[-1])
        min_h = (H - 1) * s - 2 * p + K
        min_w = (W - 1) * s - 2 * p + K
        oph, opw = out_h - min_h, out_w - min_w
        assert 0 <= oph < s and 0 <= opw < s, "invalid output_size"

        mh = _phase_meta(H, out_h, K, s, p)
        mw = _phase_meta(W, out_w, K, s, p)
        n_phase = s * s
        wx = mw['padded']
        n_h, n_w = mh['n_max'], mw['n_max']

        # Lane-dense output: pad the flattened spatial axis to a 128 multiple.
        m_flat = n_h * wx
        m_pad = _round_up(max(m_flat, 128), 128)

        # Unified tap window -> static flat offsets (phase independent).
        tap_offsets = tuple((mh['start'] + t) * wx + (mw['start'] + u)
                            for t in range(mh['t_uni'])
                            for u in range(mw['t_uni']))

        # Pack complex parts into channels (channels-first), 2D zero pad
        # (NO zero dilation), flatten spatial, and pad the flat axis so every
        # static tap slice of width m_pad stays in bounds (overrun columns are
        # cropped in the wrapper).  bf16 input halves the HBM->VMEM DMA and
        # feeds the MXU natively; accumulation stays f32 in the kernel.
        x_cat = jnp.concatenate([x[..., 0], x[..., 1]], axis=1)      # (N, 2*C_in, H, W)
        x_pad = jnp.pad(x_cat, ((0, 0), (0, 0),
                                (mh['pad_lo'], mh['pad_hi']),
                                (mw['pad_lo'], mw['pad_hi'])))
        L0 = mh['padded'] * wx
        L = _round_up(max(tap_offsets) + m_pad, 128)
        x_flat = jnp.pad(x_pad.reshape(N, c2, L0),
                         ((0, 0), (0, 0), (0, L - L0))).astype(jnp.bfloat16)

        w_comb = self._combined_weight()
        w_fused = self._fused_weight_lhs(w_comb, mh, mw).astype(jnp.bfloat16)
        R = w_fused.shape[-1]
        rows = n_phase * co2
        b_fused = jnp.tile(self._combined_bias(), (n_phase, 1))     # (rows, 1) f32

        kernel = functools.partial(
            _cconvt_kernel, tap_offsets=tap_offsets, m=m_pad)

        flops = 2 * N * rows * R * m_pad
        bytes_acc = (2 * (x_flat.size + w_fused.size) + 4 * b_fused.size
                     + 4 * N * rows * m_pad)

        out_ph = pl.pallas_call(
            kernel,
            out_shape=jax.ShapeDtypeStruct((N, rows, m_pad), jnp.float32),
            grid=(N,),
            in_specs=[
                # whole flat padded image -> one DMA per batch step
                pl.BlockSpec((1, c2, L), lambda b: (b, 0, 0)),
                # all-phase fused weight, resident across the grid
                pl.BlockSpec((rows, R), lambda b: (0, 0)),
                # fused complex bias, resident
                pl.BlockSpec((rows, 1), lambda b: (0, 0)),
            ],
            out_specs=pl.BlockSpec((1, rows, m_pad), lambda b: (b, 0, 0)),
            compiler_params=pltpu.CompilerParams(
                dimension_semantics=("parallel",),        # batch across TCs (v7x)
                vmem_limit_bytes=32 * 1024 * 1024),
            cost_estimate=pl.CostEstimate(
                flops=int(flops), transcendentals=0,
                bytes_accessed=int(bytes_acc)),
        )(x_flat, w_fused, b_fused)

        # Single-pass de-interleave: crop the lane pad, split (phase, channel)
        # and (row, flat width), move the s_h/s_w phase factors next to their
        # spatial axes, and crop to the requested output size.
        y = out_ph[:, :, :m_flat].reshape(N, s, s, co2, n_h, wx)[..., :n_w]
        y = jnp.transpose(y, (0, 3, 4, 1, 5, 2)).reshape(N, co2, n_h * s, n_w * s)
        y = y[:, :, :out_h, :out_w]

        real, imag = y[:, :cout], y[:, cout:]
        return jnp.stack([real, imag], axis=-1)      # (N, C_out, H_out, W_out, 2)


# ---- pure-JAX reference (correctness check only) ---------------------------

def _ref_conv_transpose(x_nchw, w, b, stride, padding, out_pad):
    """PyTorch-semantics ConvTranspose2d via lax.conv_general_dilated."""
    K = w.shape[-1]
    w_oihw = jnp.transpose(w[:, :, ::-1, ::-1], (1, 0, 2, 3))
    pad = [(K - 1 - padding, K - 1 - padding + out_pad[0]),
           (K - 1 - padding, K - 1 - padding + out_pad[1])]
    y = jax.lax.conv_general_dilated(
        x_nchw, w_oihw, window_strides=(1, 1), padding=pad,
        lhs_dilation=(stride, stride),
        dimension_numbers=("NCHW", "OIHW", "NCHW"))
    return y + b[None, :, None, None]


def _ref_forward(mod, x, output_size):
    N, _, H, W, _ = x.shape
    K, s, p = mod.kernel_size, mod.stride, mod.padding
    oph = output_size[-2] - ((H - 1) * s - 2 * p + K)
    opw = output_size[-1] - ((W - 1) * s - 2 * p + K)
    xr, xi = x[..., 0], x[..., 1]
    rc = lambda z: _ref_conv_transpose(z, mod.w_real, mod.b_real, s, p, (oph, opw))
    ic = lambda z: _ref_conv_transpose(z, mod.w_im, mod.b_im, s, p, (oph, opw))
    ct_real = rc(xr) - ic(xi)
    ct_im = ic(xr) + rc(xi)
    return jnp.stack([ct_real, ct_im], axis=-1)


if __name__ == "__main__":
    key = jax.random.PRNGKey(0)
    k_param, k_x = jax.random.split(key)

    N, C_IN, C_OUT = 2, 4, 4
    H = W = 8
    KSIZE, STRIDE, PAD, OUT_PAD = 3, 2, 1, 1
    OUTPUT_SIZE = (16, 16)   # (H-1)*2 - 2 + 3 + 1 = 16

    mod = CConvTranspose2d(C_IN, C_OUT, KSIZE, STRIDE,
                           output_padding=OUT_PAD, padding=PAD, key=k_param)

    x = jax.random.normal(k_x, (N, C_IN, H, W, 2), dtype=jnp.float32)

    out = jax.block_until_ready(mod(x, OUTPUT_SIZE))

    ref = _ref_forward(mod, x, OUTPUT_SIZE)
    assert out.shape == (N, C_OUT, OUTPUT_SIZE[0], OUTPUT_SIZE[1], 2), out.shape
    # bf16 MXU inputs with f32 accumulation -> loosened tolerance vs f32 reference.
    if not jnp.allclose(out, ref, atol=5e-2, rtol=5e-2):
        max_err = float(jnp.max(jnp.abs(out - ref)))
        raise AssertionError(
            f"Pallas CConvTranspose2d mismatch vs reference (max err {max_err})")

    print("KERNEL_OK")
</pallas_src>

<mosaic_0001>
module attributes {stable_mosaic.version = 11 : i64} {
  func.func @_cconvt_kernel(%arg0: i32, %arg1: memref<1x8x256xbf16, #tpu.memory_space<vmem>>, %arg2: memref<32x32xbf16, #tpu.memory_space<vmem>>, %arg3: memref<32x1xf32, #tpu.memory_space<vmem>>, %arg4: memref<1x32x128xf32, #tpu.memory_space<vmem>>) attributes {dimension_semantics = [#tpu.dimension_semantics<parallel>], iteration_bounds = array<i64: 2>, scalar_prefetch = 0 : i64, scratch_operands = 0 : i64, tpu.core_type = #tpu.core_type<tc>, window_params = [{transform_indices = @transform_0, window_bounds = array<i64: 1, 8, 256>}, {pipeline_mode = #tpu.pipeline_mode<synchronous>, transform_indices = @transform_1, window_bounds = array<i64: 32, 32>}, {pipeline_mode = #tpu.pipeline_mode<synchronous>, transform_indices = @transform_2, window_bounds = array<i64: 32, 1>}, {transform_indices = @transform_3, window_bounds = array<i64: 1, 32, 128>}]} {
    %c0 = arith.constant 0 : index
    %c0_0 = arith.constant 0 : index
    %c0_1 = arith.constant 0 : index
    %0 = vector.load %arg1[%c0, %c0_0, %c0_1] : memref<1x8x256xbf16, #tpu.memory_space<vmem>>, vector<1x8x128xbf16>
    %1 = vector.shape_cast %0 : vector<1x8x128xbf16> to vector<8x128xbf16>
    %c0_2 = arith.constant 0 : index
    %c0_3 = arith.constant 0 : index
    %c1 = arith.constant 1 : index
    %2 = vector.load %arg1[%c0_2, %c0_3, %c1] : memref<1x8x256xbf16, #tpu.memory_space<vmem>>, vector<1x8x128xbf16>
    %3 = vector.shape_cast %2 : vector<1x8x128xbf16> to vector<8x128xbf16>
    %c0_4 = arith.constant 0 : index
    %c0_5 = arith.constant 0 : index
    %c9 = arith.constant 9 : index
    %4 = vector.load %arg1[%c0_4, %c0_5, %c9] : memref<1x8x256xbf16, #tpu.memory_space<vmem>>, vector<1x8x128xbf16>
    %5 = vector.shape_cast %4 : vector<1x8x128xbf16> to vector<8x128xbf16>
    %c0_6 = arith.constant 0 : index
    %c0_7 = arith.constant 0 : index
    %c10 = arith.constant 10 : index
    %6 = vector.load %arg1[%c0_6, %c0_7, %c10] : memref<1x8x256xbf16, #tpu.memory_space<vmem>>, vector<1x8x128xbf16>
    %7 = vector.shape_cast %6 : vector<1x8x128xbf16> to vector<8x128xbf16>
    %8 = tpu.concatenate %1, %3, %5, %7 in 0 : vector<8x128xbf16>, vector<8x128xbf16>, vector<8x128xbf16>, vector<8x128xbf16> -> vector<32x128xbf16>
    %c0_8 = arith.constant 0 : index
    %c0_9 = arith.constant 0 : index
    %9 = vector.load %arg2[%c0_8, %c0_9] : memref<32x32xbf16, #tpu.memory_space<vmem>>, vector<32x32xbf16>
    %cst = arith.constant dense<0.000000e+00> : vector<32x128xf32>
    %10 = tpu.matmul %9, %8, %cst {dimension_numbers = #tpu.dot_dimension_numbers<[1], [0], [0], [1], [0, 0, 1, 1], [], []>} : vector<32x32xbf16>, vector<32x128xbf16>, vector<32x128xf32> -> vector<32x128xf32>
    %c0_10 = arith.constant 0 : index
    %c0_11 = arith.constant 0 : index
    %11 = vector.load %arg3[%c0_10, %c0_11] : memref<32x1xf32, #tpu.memory_space<vmem>>, vector<32x1xf32>
    %12 = vector.broadcast %11 : vector<32x1xf32> to vector<32x128xf32>
    %13 = arith.addf %10, %12 : vector<32x128xf32>
    %c0_12 = arith.constant 0 : index
    %c0_13 = arith.constant 0 : index
    %c0_14 = arith.constant 0 : index
    %14 = vector.load %arg4[%c0_12, %c0_13, %c0_14] : memref<1x32x128xf32, #tpu.memory_space<vmem>>, vector<1x32x128xf32>
    %15 = vector.shape_cast %14 : vector<1x32x128xf32> to vector<32x128xf32>
    %16 = vector.shape_cast %13 : vector<32x128xf32> to vector<1x32x128xf32>
    tpu.vector_store %arg4[%c0_12, %c0_13, %c0_14], %16 {strides = array<i32>} : memref<1x32x128xf32, #tpu.memory_space<vmem>>, vector<1x32x128xf32>,
    return
  }
  func.func @transform_0(%arg0: i32) -> (i32, i32, i32) {
    %c0_i32 = arith.constant 0 : i32
    %c0_i32_0 = arith.constant 0 : i32
    %c0_i32_1 = arith.constant 0 : i32
    return %arg0, %c0_i32, %c0_i32_0 : i32, i32, i32
  }
  func.func @transform_1(%arg0: i32) -> (i32, i32) {
    %c0_i32 = arith.constant 0 : i32
    %c0_i32_0 = arith.constant 0 : i32
    %c0_i32_1 = arith.constant 0 : i32
    return %c0_i32, %c0_i32_0 : i32, i32
  }
  func.func @transform_2(%arg0: i32) -> (i32, i32) {
    %c0_i32 = arith.constant 0 : i32
    %c0_i32_0 = arith.constant 0 : i32
    %c0_i32_1 = arith.constant 0 : i32
    return %c0_i32, %c0_i32_0 : i32, i32
  }
  func.func @transform_3(%arg0: i32) -> (i32, i32, i32) {
    %c0_i32 = arith.constant 0 : i32
    %c0_i32_0 = arith.constant 0 : i32
    %c0_i32_1 = arith.constant 0 : i32
    return %arg0, %c0_i32, %c0_i32_0 : i32, i32, i32
  }
}

</mosaic_0001>

<bundles_post_ra>
// kernel: tpu_custom_call.1
= control target key start
LH: loop header
LB: loop body
LE: loop exit
PB: predicated region body
PF: predicated region fallthrough
CT: control target
= control target key end

     0   :  { %8 = vsyncpa [#allocation3], 0  ;;  %s676_s0 = inlined_call_operand.vmem [shape: bf16[2,8,256], index: 0, kind: input, shape index: {}]   ;;  %s677_s1 = inlined_call_operand.vmem [shape: bf16[32,32], index: 1, kind: input, shape index: {}]   ;;  %s678_s2 = inlined_call_operand.vmem [shape: f32[32,1], index: 2, kind: input, shape index: {}]   ;;  %s679_s3 = inlined_call_operand.hbm [shape: f32[2,32,128], index: 3, kind: output, shape index: {}]  }
   0x1   :  { %10 = vsyncpa [#allocation3 + $0x1], 0  ;;  %s550_s12 = smov 0   ;;  %s552_s13 = smov 0  }
   0x2   :  { %s554_s14 = smov 0   ;;  %s556_s15 = smov 0  }
   0x3 LB: > { %s571_s16 = sadd.s32 4294967295, %s521_s15   ;;  %s378_s17 = sadd.s32 4294967294, %s521_s15   ;;  %s521_s15 = sphi %s556_s15, %s685_s15   ;;  %s517_s14 = sphi %s554_s14, %s684_s14   ;;  %s513_s13 = sphi %s552_s13, %s683_s13   ;;  %s509_s12 = sphi %s550_s12, %s682_s12  }
   0x4   : > { %s575_s18 = sadd.s32 1, %s521_s15   ;;  %s91_s19 = sadd.s32 1, %s517_s14 }
   0x5   : > { %s88_s20 = ssub.s32 %s521_s15, %s575_s18  ;;  %p101_p0 = scmp.ne.s32.totalorder %s517_s14, %s513_s13 }
   0x6   : > { %p89_p1 = scmp.eq.s32.totalorder %s88_s20, 0  ;;  %p102_p2 = scmp.eq.s32.totalorder %s571_s16, 1 }
   0x7   : > { %p107_p3 = scmp.ne.s32.totalorder %s513_s13, %s509_s12  ;;  %p108_p4 = scmp.eq.s32.totalorder %s378_s17, 1 }
   0x8   : > { %s586_s21 = scalar_select %p89_p1, %s517_s14, %s91_s19  }
   0x9   : > { %p588_p5 = por %p102_p2, %p101_p0  ;;  %p592_p6 = por %p108_p4, %p107_p3 }
   0xa   : > { %p381_p7 = scmp.ge.s32.totalorder %s521_s15, 1  ;;  %p140_p8 = scmp.lt.s32.totalorder %s521_s15, 3 }
   0xc   : > { %p141_p9 = pnand %p381_p7, %p140_p8 }
   0xd   : > { %p164_p10 = scmp.lt.s32.totalorder (!%p141_p9), %s571_s16, 1  ;;  %s523_s4 = smov (!%p141_p9), 118  }
   0xe   : > { %144 = sbr.rel (%p141_p9) target bundleno = 370 (0x172), region = 32  ;;  %s524_s5 = smov (!%p141_p9), 119  }
   0xf   : > { %s526_s6 = smov (!%p141_p9), 127   ;;  %s161_s26 = sand.u32 (!%p141_p9), 1, %s513_s13  }
  0x10   : > { %s382_s27 = sshll.u32 (!%p141_p9), %s161_s26, 5  ;;  %s397_s30 = sshll.u32 (!%p141_p9), %s571_s16, 9 }
  0x11   : > { %s636_s7 = scalar_lea.sflag (!%p141_p9), [#allocation3], %s161_s26  ;;  %s527_s8 = smov (!%p141_p9), [#allocation2]  }
  0x12   : > { %s465_s9 = sshll.u32 (!%p141_p9), %s527_s8, 4  ;;  %s466_s9 = int_to_ptr.vmem [resolvable:$false] %s465_s9 }
  0x13   : > { %s165_s24 = scalar_select %p164_p10, %s571_s16, 1  ;;  %v459_v2 = vld [vmem:[%s677_s1] sm:$0xff]   ;;  %vm242_vm0 = vcmask 261120   ;;  %v525_v4 = vmov 0   ;;  %v209_v5 = vld [vmem:[%s678_s2 + $0x8] sm:$0xff]  ;;  %v210_v7 = vld [vmem:[%s678_s2 + $0x10] sm:$0xff] }
  0x14   : > { %406 = vmatprep.mubr.msk.bf16.mxu0 %vm242_vm0, %v459_v2  ;;  %456 = vset.pattern.permute.xlu1 %v525_v4  ;;  %v208_v6 = vld [vmem:[%s678_s2] sm:$0xff]  ;;  %v211_v8 = vld [vmem:[%s678_s2 + $0x18] sm:$0xff]  ;;  %vm193_vm1 = vcmask 965632   ;;  %vm187_vm2 = vcmask 973824   ;;  %vm195_vm3 = vcmask 1043456   ;;  %vm181_vm4 = vcmask 1039360  }
  0x15   : > { %s396_s25 = sshll.u32 %s165_s24, 3  ;;  %455 = vset.pattern.permute.xlu0 %v525_v4  ;;  %v460_v21 = vld [vmem:[%s677_s1 + $0x8] sm:$0xff]   ;;  %s467_s10 = scalar_lea.vmem %s466_s9, 1024 }
  0x16   : > { %s603_s28 = scalar_lea.vmem %s676_s0, %s396_s25 }
  0x17   : > { %v171_v0 = vld [vmem:[%s603_s28] sm:$0xff] }
  0x18   : > { %v385_v1 = vcombine.low %v171_v0, %v171_v0  ;;  %v386_v3 = vcombine.high %v171_v0, %v171_v0  ;;  %v170_v16 = vld [vmem:[%s603_s28] sm:$0xf]  ;;  %s163_s28 = scalar_lea.vmem [#allocation2], %s382_s27 }
  0x19   : > { %s316_s29 = sshll.u32 %s163_s28, 4  ;;  %s629_s29 = int_to_ptr.vmem [resolvable:$true] %s316_s29 }
  0x1a   : > { %189 = vrot.lane.b32.xlu1 %v385_v1, %s523_s4  ;;  %183 = vrot.lane.b32.xlu0 %v385_v1, %s524_s5  ;;  %s461_s16 = scalar_lea.vmem %s629_s29, 512  ;;  %p468_p0 = scmp.lt.s32.totalorder %s629_s29, %s466_s9 }
  0x1b   : > { %p462_p11 = scmp.ne.s32.totalorder %s629_s29, %s461_s16  ;;  %p469_p1 = scmp.lt.s32.totalorder %s467_s10, %s461_s16 }
  0x1d   : > { %p463_p12 = pnand %p462_p11, %p588_p5  ;;  %p470_p2 = por %p469_p1, %p468_p0 }
  0x1e   : > { %191 = vrot.lane.b32.xlu1 %v386_v3, %s523_s4  ;;  %185 = vrot.lane.b32.xlu0 %v386_v3, %s524_s5 }
  0x1f   : > { %p464_p13 = pneg %p463_p12 }
  0x21   : > { %p471_p3 = pnand %p470_p2, %p464_p13 }
  0x22   : > { %179 = vrot.lane.b32.xlu1 %v386_v3, %s526_s6  ;;  %177 = vrot.lane.b32.xlu0 %v385_v1, %s526_s6  ;;  %s634_s6 = scalar_lea.hbm %s679_s3, %s397_s30 }
  0x26   : > { %219 = vperm.xlu1 %456, %v209_v5   ;;  %214 = vperm.xlu0 %455, %v208_v6  }
  0x2a   : > { %224 = vperm.xlu1 %456, %v210_v7   ;;  %229 = vperm.xlu0 %455, %v211_v8  }
  0x8c   : > { %v190_v9 = vpop.permute.xlu1 %189  ;;  %v184_v10 = vpop.permute.xlu0 %183 }
  0x90   : > { %v192_v11 = vpop.permute.xlu1 %191  ;;  %v186_v12 = vpop.permute.xlu0 %185 }
  0x91   : > { %v194_v13 = vsel %vm193_vm1, %v190_v9, %v192_v11  ;;  %v188_v14 = vsel %vm187_vm2, %v184_v10, %v186_v12 }
  0x92   : > { %v202_v15 = vsel %vm195_vm3, %v188_v14, %v194_v13 }
  0x93   : > { %402 = vmatprep.subr.bf16.mxu0 %v202_v15 }
  0x94   : > { %v180_v17 = vpop.permute.xlu1 %179  ;;  %403 = vmatpush3.bf16.msra.mxu0 %v202_v15  ;;  %v178_v18 = vpop.permute.xlu0 %177 }
  0x95   : > { %v182_v19 = vsel %vm181_vm4, %v178_v18, %v180_v17 }
  0x96   : > { %v198_v20 = vsel %vm195_vm3, %v170_v16, %v182_v19 }
  0x97   : > { %404 = vmatprep.subr.bf16.mxu0 %v198_v20 }
  0x98   : > { %405 = vmatpush3.bf16.msra.mxu0 %v198_v20 }
  0x9b   : > { %407 = vmatmul.mubr.msk.bf16.vlgmr.msra.gmra.mxu0 %vm242_vm0, %v460_v21 }
  0xa1   : > { %v220_v22 = vpop.permute.xlu1 %219  ;;  %v215_v23 = vpop.permute.xlu0 %214 }
  0xa5   : > { %v225_v24 = vpop.permute.xlu1 %224  ;;  %v230_v29 = vpop.permute.xlu0 %229 }
 0x15b   : > { %v408_v25 = vpop.f32.mrf.mxu0 }
 0x15c   : > { %v292_v26 = vadd.f32 %v408_v25, %v225_v24 }
 0x15d   : > { %v283_v27 = vpop.f32.mrf.mxu0 }
 0x15e   : > { %300 = vst [vmem:[%s163_s28 + $0x10] sm:$0xff] %v292_v26  ;;  %v284_v28 = vadd.f32 %v283_v27, %v215_v23 }
 0x15f   : > { %v409_v30 = vpop.f32.mrf.mxu0 }
 0x160   : > { %298 = vst [vmem:[%s163_s28] sm:$0xff] %v284_v28  ;;  %v295_v31 = vadd.f32 %v409_v30, %v230_v29 }
 0x161   : > { %v286_v32 = vpop.f32.mrf.mxu0 }
 0x162   : > { %301 = vst [vmem:[%s163_s28 + $0x18] sm:$0xff] %v295_v31  ;;  %v287_v33 = vadd.f32 %v286_v32, %v220_v22 }
 0x164   : > { %299 = vst [vmem:[%s163_s28 + $0x8] sm:$0xff] %v287_v33 }
 0x165   : > { %474 = shalt.err (!%p471_p3)
}
 0x166   : > { %s475_s11 = scalar_lea.hbm %s634_s6, 512  ;;  %s479_s20 = scalar_lea.hbm %s679_s3, 1024 }
 0x167   : > { %p476_p4 = scmp.ne.s32.totalorder %s634_s6, %s475_s11  ;;  %p480_p9 = scmp.lt.s32.totalorder %s634_s6, %s679_s3 }
 0x168   : > { %p481_p10 = scmp.lt.s32.totalorder %s479_s20, %s475_s11 }
 0x169   : > { %p477_p7 = pnand %p476_p4, %p588_p5 }
 0x16a   : > { %p482_p11 = por %p481_p10, %p480_p9 }
 0x16b   : > { %p478_p8 = pneg %p477_p7 }
 0x16d   : > { %p483_p12 = pnand %p482_p11, %p478_p8 }
 0x16f   : > { %486 = shalt.err (!%p483_p12)
}
 0x170   : > { %s528_s26 = smov 128   ;;  %s529_s27 = smov 8  }
 0x171   : > { %410 = dma.vmem_to_hbm [thread:$0]  (%p588_p5), %s629_s29, 512, %s634_s6, %s636_s7, %s528_s26, %s528_s26, %s529_s27  }
 0x172 PF: > { %p416_p13 = scmp.ge.s32.totalorder %s521_s15, 2  ;;  %s331_s28 = sand.u32 1, %s509_s12  }
 0x173   : > { %s332_s30 = scalar_lea.sflag [#allocation3], %s331_s28 }
 0x174   : > { %p413_p0 = pnand %p416_p13, %p592_p6 }
 0x176   : > { %p414_p1 = pneg %p413_p0 }
 0x178   : > { %504 = dma.done.wait (%p414_p1), %s332_s30, 512  }
 0x179   : > { %506 = vsyncadd (%p414_p1), %s332_s30, 4294966784  ;;  %p13_p2 = scmp.ge.s32.totalorder %s575_s18, 4   ;;  %s682_s12 = smov %s513_s13 }
 0x17a   : > { %s683_s13 = smov %s517_s14  ;;  %s684_s14 = smov %s586_s21 }
 0x17b   : > { %s685_s15 = smov %s575_s18  ;;  %15 = sbr.rel (!%p13_p2) target bundleno = 3 (0x3), region = 67 }
 0x180   :  { %337 = vsyncpa [#allocation3], 1 }
 0x181   :  { %339 = vsyncpa [#allocation3 + $0x1], 1 }

</bundles_post_ra>
